<compile_context>
chip_gen: v7x
topology: tpu7x:2x2x1
jax: 0.10.0
libtpu: 0.0.40
codegen_flags: <defaults>
</compile_context>

<pallas_src>
import functools

import numpy as np
import jax
import jax.numpy as jnp
from jax.experimental import pallas as pl
from jax.experimental.pallas import tpu as pltpu


def _ceil_to(a, m):
    return ((a + m - 1) // m) * m


def _cdiv(a, b):
    return (a + b - 1) // b


def _categorical_activation_kernel(num_classes, rc_ref, x_ref, bnd_ref,
                                   mask_ref, o_ref):
    """One (t_tile, n_tile) tile of the forward pass.

    rc_ref:   (num_classes,) int32 in SMEM (scalar prefetch) - class permutation.
    x_ref:    (t_tile, n_tile) raw input tile.
    bnd_ref:  (max(1, num_classes-1), n_tile) SORTED raw-x-domain class
              boundaries (dummy, unread row when num_classes == 1).
    mask_ref: (1, n_tile) int32; bit0 = categorical mask, bit1 = ordered mask
              (ordered is a subset of categorical, as in the torch module).
    o_ref:    (t_tile, n_tile) output tile.
    """
    x = x_ref[...].astype(jnp.float32)

    # Softsign via EUP approximate reciprocal + one Newton step (keeps the
    # expensive op off the VALU slot; compares below use raw x, so the bucket
    # count is unaffected by the approximation).
    d = 1.0 + jnp.abs(x)
    r = pl.reciprocal(d, approx=True)
    r = r * (2.0 - d * r)            # one Newton-Raphson refinement step
    s = x * r

    # Fused bucketize + ordered-class remap over sorted raw-domain boundaries.
    #   cnt          = #(boundaries strictly below x)
    #   cat_val      = cnt - K/2                       (accumulator seeded at -K/2)
    #   ord_val      = sum_c rc[c] * I(cnt == c + K/2) (only K even can match the
    #                  float-equality of randomize_classes; for odd K it is 0)
    # With sorted boundaries, I(cnt == m) = gt_{m-1} - gt_m telescopes, so the
    # remap becomes a per-boundary scalar-weighted add of the already-computed gt.
    half = num_classes // 2
    cat_val = jnp.full(x.shape, -(num_classes / 2.0), jnp.float32)
    ord_val = jnp.zeros(x.shape, jnp.float32)
    if num_classes > 1:
        bnd = bnd_ref[...].astype(jnp.float32)          # (K-1, n_tile)
        for k in range(num_classes - 1):
            gt = (x > bnd[k]).astype(jnp.float32)       # row bcast over sublanes
            cat_val = cat_val + gt
            if num_classes % 2 == 0 and k >= half - 1:
                w = rc_ref[k - half + 1]                # SMEM scalar reads
                if k >= half:
                    w = w - rc_ref[k - half]
                ord_val = ord_val + w.astype(jnp.float32) * gt

    m = mask_ref[...]                                   # (1, n_tile) int32
    cat_m = (m & 1) != 0
    ord_m = (m & 2) != 0
    out = jnp.where(cat_m, cat_val, s)                  # categorical positions
    out = jnp.where(ord_m, ord_val, out)                # ordered (subset of cat.)
    o_ref[...] = out.astype(o_ref.dtype)
    # TODO(synk): keep_activation_size=True path (|x|.mean over T rescale) not
    # implemented; module default is False.


def categorical_activation(x, boundaries, cat_mask, ord_mask, random_classes,
                           num_classes, *, block_bytes=4 * 1024 * 1024,
                           lane_tile_max=2048):
    """x: (T, B, H); boundaries: (num_classes-1, B, H) in the RAW-x domain
    (i.e. the x values at the sampled boundary indices); masks: (B, H) bool."""
    T, B, H = x.shape
    N = B * H
    dtype_bytes = jnp.dtype(x.dtype).itemsize
    sub = {4: 8, 2: 16, 1: 32}.get(dtype_bytes, 8)      # dtype sublane multiple

    # Lane tile: multiple of 128, capped; T tile: largest sublane multiple whose
    # x block is ~block_bytes (double-buffered x+out working set stays well under
    # every generation's VMEM, including v7x's 64 MiB).
    n_tile = min(_ceil_to(N, 128), lane_tile_max)
    t_tile = max(sub, (block_bytes // (n_tile * dtype_bytes)) // sub * sub)
    t_tile = min(t_tile, _ceil_to(T, sub))
    grid = (_cdiv(N, n_tile), _cdiv(T, t_tile))         # T innermost (fastest)

    kb = max(1, num_classes - 1)
    x2 = x.reshape(T, N)
    if num_classes > 1:
        # Sorted raw-domain boundaries: count is order-invariant; sorting makes
        # the in-kernel telescoped ordered-class remap valid.
        b2 = jnp.sort(boundaries.reshape(num_classes - 1, N).astype(x.dtype),
                      axis=0)
    else:
        b2 = jnp.zeros((1, N), x.dtype)                 # dummy row, never read
    mask = (cat_mask.reshape(1, N).astype(jnp.int32)
            + 2 * ord_mask.reshape(1, N).astype(jnp.int32))

    kernel = functools.partial(_categorical_activation_kernel, num_classes)
    out = pl.pallas_call(
        kernel,
        out_shape=jax.ShapeDtypeStruct((T, N), x.dtype),
        grid_spec=pltpu.PrefetchScalarGridSpec(
            num_scalar_prefetch=1,                      # random_classes -> SMEM
            grid=grid,
            in_specs=[
                pl.BlockSpec((t_tile, n_tile), lambda j, i, rc: (i, j)),  # x
                pl.BlockSpec((kb, n_tile),     lambda j, i, rc: (0, j)),  # bounds
                pl.BlockSpec((1, n_tile),      lambda j, i, rc: (0, j)),  # masks
            ],
            out_specs=pl.BlockSpec((t_tile, n_tile), lambda j, i, rc: (i, j)),
        ),
        compiler_params=pltpu.CompilerParams(
            dimension_semantics=("parallel", "parallel"),
            vmem_limit_bytes=48 * 1024 * 1024),
    )(random_classes.astype(jnp.int32), x2, b2, mask)
    return out.reshape(T, B, H)


def _reference(x, boundaries_softsign, cat_mask, ord_mask, random_classes,
               num_classes):
    """Pure-JAX mirror of the torch module (softsign-domain boundaries)."""
    s = x / (1.0 + jnp.abs(x))
    cnt = (s[None] > boundaries_softsign[:, None]).sum(0).astype(jnp.float32)
    cat_val = cnt - num_classes / 2.0
    classes = jnp.arange(num_classes, dtype=jnp.float32)
    ord_val = ((cat_val[..., None] == classes)
               * random_classes.astype(jnp.float32)).sum(-1)
    ref = jnp.where(cat_mask[None], cat_val, s)
    ref = jnp.where(ord_mask[None], ord_val, ref)
    return ref


if __name__ == "__main__":
    # T=20, H=30 deliberately exercise both ragged-edge paths
    # (N = 120 inside one 128-lane block, T = 20 inside one 24-row block).
    T, B, H = 20, 4, 30
    categorical_p, ordered_p = 0.1, 0.7

    # num_classes ~ bounded zipf(a=0.8) over [1, 10) (as in zipf_sampler_f,
    # without scipy).  Also run K=1 (no boundaries), one odd and one even K so
    # every branch of the remap logic is exercised.
    vals = np.arange(1, 10)
    w = vals ** (-0.8)
    w = w / w.sum()
    k_zipf = int(np.random.default_rng(0).choice(vals, p=w))

    key = jax.random.PRNGKey(0)
    kx, kc, ko, kbnd, kp = jax.random.split(key, 5)

    x = jax.random.normal(kx, (T, B, H), dtype=jnp.float32) * 2.0
    cat_mask = jax.random.uniform(kc, (B, H)) < categorical_p
    ord_mask = jnp.logical_and(jax.random.uniform(ko, (B, H)) < ordered_p,
                               cat_mask)
    s_host = x / (1.0 + jnp.abs(x))

    for num_classes in sorted({k_zipf, 1, 3, 4}):
        # class boundaries = x values at random time indices per (b,h); the
        # kernel takes them in the raw-x domain, the reference (like the torch
        # module) in the softsign domain.
        if num_classes > 1:
            bnd_idx = jax.random.randint(kbnd, (num_classes - 1, B, H), 0, T)
            boundaries_raw = jnp.take_along_axis(x, bnd_idx, axis=0)
            boundaries_soft = jnp.take_along_axis(s_host, bnd_idx, axis=0)
        else:
            boundaries_raw = jnp.zeros((0, B, H), x.dtype)
            boundaries_soft = jnp.zeros((0, B, H), x.dtype)
        random_classes = jax.random.permutation(kp, num_classes).astype(jnp.int32)

        out = categorical_activation(x, boundaries_raw, cat_mask, ord_mask,
                                     random_classes, num_classes)
        out = jax.block_until_ready(out)

        ref = _reference(x, boundaries_soft, cat_mask, ord_mask, random_classes,
                         num_classes)
        # Bucket / ordered values are exact integers (+/- K/2); only the plain
        # softsign path carries the (Newton-refined) approx-reciprocal error,
        # which is orders of magnitude below this tolerance.
        np.testing.assert_allclose(np.asarray(out), np.asarray(ref),
                                   rtol=1e-4, atol=1e-5)

    print("KERNEL_OK")
</pallas_src>

<mosaic_0001>
module attributes {stable_mosaic.version = 11 : i64} {
  func.func @_categorical_activation_kernel(%arg0: i32, %arg1: i32, %arg2: memref<1xi32, #tpu.memory_space<smem>>, %arg3: memref<24x128xf32, #tpu.memory_space<vmem>>, %arg4: memref<1x128xf32, #tpu.memory_space<vmem>>, %arg5: memref<1x128xi32, #tpu.memory_space<vmem>>, %arg6: memref<24x128xf32, #tpu.memory_space<vmem>>) attributes {dimension_semantics = [#tpu.dimension_semantics<parallel>, #tpu.dimension_semantics<parallel>], iteration_bounds = array<i64: 1, 1>, scalar_prefetch = 1 : i64, scratch_operands = 0 : i64, tpu.core_type = #tpu.core_type<tc>, window_params = [{transform_indices = @transform_0, window_bounds = array<i64: 24, 128>}, {transform_indices = @transform_1, window_bounds = array<i64: 1, 128>}, {transform_indices = @transform_2, window_bounds = array<i64: 1, 128>}, {transform_indices = @transform_3, window_bounds = array<i64: 24, 128>}]} {
    %c0 = arith.constant 0 : index
    %c0_0 = arith.constant 0 : index
    %0 = vector.load %arg3[%c0, %c0_0] : memref<24x128xf32, #tpu.memory_space<vmem>>, vector<24x128xf32>
    %1 = math.absf %0 : vector<24x128xf32>
    %cst = arith.constant 1.000000e+00 : f32
    %2 = vector.broadcast %cst : f32 to vector<24x128xf32>
    %3 = arith.addf %2, %1 : vector<24x128xf32>
    %4 = tpu.reciprocal %3 {approx = true} : vector<24x128xf32> -> vector<24x128xf32>
    %5 = arith.mulf %3, %4 : vector<24x128xf32>
    %cst_1 = arith.constant 2.000000e+00 : f32
    %6 = vector.broadcast %cst_1 : f32 to vector<24x128xf32>
    %7 = arith.subf %6, %5 : vector<24x128xf32>
    %8 = arith.mulf %4, %7 : vector<24x128xf32>
    %9 = arith.mulf %0, %8 : vector<24x128xf32>
    %cst_2 = arith.constant -5.000000e-01 : f32
    %10 = vector.broadcast %cst_2 : f32 to vector<24x128xf32>
    %cst_3 = arith.constant 0.000000e+00 : f32
    %11 = vector.broadcast %cst_3 : f32 to vector<24x128xf32>
    %c0_4 = arith.constant 0 : index
    %c0_5 = arith.constant 0 : index
    %12 = vector.load %arg5[%c0_4, %c0_5] : memref<1x128xi32, #tpu.memory_space<vmem>>, vector<1x128xi32>
    %c1_i32 = arith.constant 1 : i32
    %13 = vector.broadcast %c1_i32 : i32 to vector<1x128xi32>
    %14 = arith.andi %12, %13 : vector<1x128xi32>
    %c0_i32 = arith.constant 0 : i32
    %15 = vector.broadcast %c0_i32 : i32 to vector<1x128xi32>
    %16 = arith.cmpi ne, %14, %15 : vector<1x128xi32>
    %c2_i32 = arith.constant 2 : i32
    %17 = vector.broadcast %c2_i32 : i32 to vector<1x128xi32>
    %18 = arith.andi %12, %17 : vector<1x128xi32>
    %c0_i32_6 = arith.constant 0 : i32
    %19 = vector.broadcast %c0_i32_6 : i32 to vector<1x128xi32>
    %20 = arith.cmpi ne, %18, %19 : vector<1x128xi32>
    %21 = vector.shape_cast %16 : vector<1x128xi1> to vector<1x128xi1>
    %22 = vector.broadcast %21 : vector<1x128xi1> to vector<24x128xi1>
    %23 = arith.select %22, %10, %9 : vector<24x128xi1>, vector<24x128xf32>
    %24 = vector.shape_cast %20 : vector<1x128xi1> to vector<1x128xi1>
    %25 = vector.broadcast %24 : vector<1x128xi1> to vector<24x128xi1>
    %26 = arith.select %25, %11, %23 : vector<24x128xi1>, vector<24x128xf32>
    %c0_7 = arith.constant 0 : index
    %c0_8 = arith.constant 0 : index
    %27 = vector.load %arg6[%c0_7, %c0_8] : memref<24x128xf32, #tpu.memory_space<vmem>>, vector<24x128xf32>
    tpu.vector_store %arg6[%c0_7, %c0_8], %26 {strides = array<i32>} : memref<24x128xf32, #tpu.memory_space<vmem>>, vector<24x128xf32>,
    return
  }
  func.func @transform_0(%arg0: i32, %arg1: i32, %arg2: memref<1xi32, #tpu.memory_space<smem>>) -> (i32, i32) {
    %c0_i32 = arith.constant 0 : i32
    return %arg1, %arg0 : i32, i32
  }
  func.func @transform_1(%arg0: i32, %arg1: i32, %arg2: memref<1xi32, #tpu.memory_space<smem>>) -> (i32, i32) {
    %c0_i32 = arith.constant 0 : i32
    %c0_i32_0 = arith.constant 0 : i32
    return %c0_i32, %arg0 : i32, i32
  }
  func.func @transform_2(%arg0: i32, %arg1: i32, %arg2: memref<1xi32, #tpu.memory_space<smem>>) -> (i32, i32) {
    %c0_i32 = arith.constant 0 : i32
    %c0_i32_0 = arith.constant 0 : i32
    return %c0_i32, %arg0 : i32, i32
  }
  func.func @transform_3(%arg0: i32, %arg1: i32, %arg2: memref<1xi32, #tpu.memory_space<smem>>) -> (i32, i32) {
    %c0_i32 = arith.constant 0 : i32
    return %arg1, %arg0 : i32, i32
  }
}

</mosaic_0001>

<bundles_post_ra>
// kernel: tpu_custom_call.1
= control target key start
LH: loop header
LB: loop body
LE: loop exit
PB: predicated region body
PF: predicated region fallthrough
CT: control target
= control target key end

     0   :  { %10 = vsyncpa [#allocation5], 0  ;;  %s223_s0 = inlined_call_operand.<no memory space> [shape: s32[1], index: 0, kind: input, shape index: {}]   ;;  %s224_s1 = inlined_call_operand.hbm [shape: f32[20,120], index: 1, kind: input, shape index: {}]   ;;  %s225_s2 = inlined_call_operand.vmem [shape: f32[1,120], index: 2, kind: input, shape index: {}]   ;;  %s226_s3 = inlined_call_operand.vmem [shape: s32[1,120], index: 3, kind: input, shape index: {}]   ;;  %s227_s4 = inlined_call_operand.hbm [shape: f32[20,120], index: 4, kind: output, shape index: {}]  }
   0x1   :  { %11 = vsyncpa [#allocation6], 0  ;;  %s157_s15 = smov [#allocation4]   ;;  %s109_s0 = scalar_lea.hbm %s224_s1, 384 }
   0x2   :  { %s17_s16 = sshll.u32 %s157_s15, 4  ;;  %p110_p0 = scmp.ne.s32.totalorder %s224_s1, %s109_s0  ;;  %s18_s16 = int_to_ptr.vmem [resolvable:$true] %s17_s16 }
   0x3   :  { %p113_p1 = scmp.lt.u32.totalorder %s109_s0, %s224_s1 }
   0x5   :  { %p115_p2 = pnand %p113_p1, %p110_p0 }
   0x7   :  { %118 = shalt.err (!%p115_p2)
}
   0x8   :  { %s119_s22 = scalar_lea.vmem %s18_s16, 384  ;;  %p124_p4 = scmp.lt.s32.totalorder %s18_s16, %s18_s16 }
   0x9   :  { %p120_p3 = scmp.ne.s32.totalorder %s18_s16, %s119_s22  ;;  %p125_p5 = scmp.lt.s32.totalorder %s119_s22, %s119_s22 }
   0xb   :  { %p126_p6 = por %p125_p5, %p124_p4 }
   0xd   :  { %p127_p7 = pnand %p126_p6, %p120_p3 }
   0xf   :  { %130 = shalt.err (!%p127_p7)
}
  0x10   :  { %s158_s23 = smov 128   ;;  %s159_s24 = smov 8  }
  0x11   :  { %23 = dma.hbm_to_vmem [thread:$0]  %s224_s1, 384, %s18_s16, [#allocation5], %s158_s23, %s158_s23, %s159_s24  }
  0x12   :  { %153 = dma.done.wait [#allocation5], 384  }
  0x13   :  { %154 = vsyncadd [#allocation5], 4294966912  ;;  %v31_v0 = vld [vmem:[#allocation4] sm:$0xff]  ;;  %v32_v1 = vld [vmem:[#allocation4 + $0x8] sm:$0xff]  ;;  %v61_v9 = vlaneseq  ;;  %v160_v15 = vmov 0   ;;  %s161_s1 = smov [#allocation7]  }
  0x14   :  { %v34_v2 = vand.u32 2147483647, %v31_v0  ;;  %v35_v3 = vand.u32 2147483647, %v32_v1  ;;  %v33_v4 = vld [vmem:[#allocation4 + $0x10] sm:$0xff] }
  0x15   :  { %v55_v7 = vld [vmem:[%s226_s3] sm:$0x1]  ;;  %v36_v8 = vand.u32 2147483647, %v33_v4  ;;  %v62_v13 = vshrl.u32 %v61_v9, 7  ;;  %s86_s3 = sshll.u32 %s161_s1, 4  ;;  %s87_s3 = int_to_ptr.vmem [resolvable:$true] %s86_s3 }
  0x16   :  { %v37_v5 = vadd.f32 1.0, %v34_v2  ;;  %v38_v6 = vadd.f32 1.0, %v35_v3  ;;  %v56_v11 = vand.u32 1, %v55_v7  ;;  %v58_v12 = vand.u32 2, %v55_v7  ;;  %s131_s29 = scalar_lea.vmem %s87_s3, 384  ;;  %p136_p9 = scmp.lt.s32.totalorder %s87_s3, %s87_s3 }
  0x17   :  { %v39_v10 = vadd.f32 1.0, %v36_v8  ;;  %v63_v14 = vsub.s32 0, %v62_v13  ;;  %p132_p8 = scmp.ne.s32.totalorder %s87_s3, %s131_s29  ;;  %p137_p10 = scmp.lt.s32.totalorder %s131_s29, %s131_s29 }
  0x18   :  { %103 = vrcp.f32 %v37_v5  ;;  %vm57_vm0 = vcmp.ne.s32.totalorder %v56_v11, 0  ;;  %vm59_vm1 = vcmp.ne.s32.totalorder %v58_v12, 0 }
  0x19   :  { %105 = vrcp.f32 %v38_v6  ;;  %v60_v16 = vsel %vm57_vm0, 1, %v160_v15  ;;  %v69_v18 = vsel %vm59_vm1, 1, %v160_v15  ;;  %p138_p11 = por %p137_p10, %p136_p9 }
  0x1a   :  { %107 = vrcp.f32 %v39_v10  ;;  %v64_v21 = vrot.slane %v60_v16, %v63_v14  ;;  %v73_v25 = vrot.slane %v69_v18, %v63_v14 }
  0x1b   :  { %p139_p12 = pnand %p138_p11, %p132_p8 }
  0x1c   :  { %vm65_vm2 = vcmp.eq.s32.totalorder %v64_v21, 1  ;;  %vm74_vm3 = vcmp.eq.s32.totalorder %v73_v25, 1 }
  0x22   :  { %v104_v17 = vpop.eup %103 }
  0x23   :  { %v106_v19 = vpop.eup %105  ;;  %v43_v20 = vmul.f32 %v104_v17, %v37_v5 }
  0x24   :  { %v44_v22 = vmul.f32 %v106_v19, %v38_v6  ;;  %v108_v23 = vpop.eup %107 }
  0x25   :  { %v46_v24 = vsub.f32 2.0, %v43_v20  ;;  %v45_v27 = vmul.f32 %v108_v23, %v39_v10 }
  0x26   :  { %v47_v26 = vsub.f32 2.0, %v44_v22 }
  0x27   :  { %v49_v28 = vmul.f32 %v104_v17, %v46_v24  ;;  %v48_v30 = vsub.f32 2.0, %v45_v27 }
  0x28   :  { %v50_v29 = vmul.f32 %v106_v19, %v47_v26 }
  0x29   :  { %v52_v31 = vmul.f32 %v49_v28, %v31_v0  ;;  %v51_v33 = vmul.f32 %v108_v23, %v48_v30 }
  0x2a   :  { %v53_v32 = vmul.f32 %v50_v29, %v32_v1 }
  0x2b   :  { %v66_v34 = vsel %vm65_vm2, -0.5, %v52_v31  ;;  %v54_v37 = vmul.f32 %v51_v33, %v33_v4 }
  0x2c   :  { %v75_v35 = vsel %vm74_vm3, 0.0, %v66_v34  ;;  %v67_v36 = vsel %vm65_vm2, -0.5, %v53_v32 }
  0x2d   :  { %78 = vst [vmem:[#allocation7] sm:$0xff] %v75_v35  ;;  %v76_v38 = vsel %vm74_vm3, 0.0, %v67_v36  ;;  %v68_v39 = vsel %vm65_vm2, -0.5, %v54_v37 }
  0x2e   :  { %79 = vst [vmem:[#allocation7 + $0x8] sm:$0xff] %v76_v38  ;;  %v77_v40 = vsel %vm74_vm3, 0.0, %v68_v39 }
  0x2f   :  { %80 = vst [vmem:[#allocation7 + $0x10] sm:$0xff] %v77_v40 }
  0x30   :  { %142 = shalt.err (!%p139_p12)
}
  0x31   :  { %s143_s6 = scalar_lea.hbm %s227_s4, 384 }
  0x32   :  { %p144_p13 = scmp.ne.s32.totalorder %s227_s4, %s143_s6  ;;  %p147_p0 = scmp.lt.u32.totalorder %s143_s6, %s227_s4 }
  0x34   :  { %p149_p1 = pnand %p147_p0, %p144_p13 }
  0x36   :  { %152 = shalt.err (!%p149_p1)
}
  0x37   :  { %92 = dma.vmem_to_hbm [thread:$0]  %s87_s3, 384, %s227_s4, [#allocation6], %s158_s23, %s158_s23, %s159_s24  }
  0x38   :  { %155 = dma.done.wait [#allocation6], 384  }
  0x39   :  { %156 = vsyncadd [#allocation6], 4294966912 }
  0x3a   :  { %96 = vsyncpa [#allocation5], 1 }
  0x3b   :  { %97 = vsyncpa [#allocation6], 1 }

</bundles_post_ra>
